<compile_context>
chip_gen: v7x
topology: tpu7x:2x2x1
jax: 0.10.0
libtpu: 0.0.40
codegen_flags: <defaults>
</compile_context>

<pallas_src>
import math

import jax
import jax.numpy as jnp
from jax.experimental import pallas as pl
from jax.experimental.pallas import tpu as pltpu


def _round_up(x: int, m: int) -> int:
    return ((x + m - 1) // m) * m


def _gather_kernel(idx_ref, table_ref, out_ref):
    # idx_ref:   (N_pad,)         int32   SMEM (scalar prefetch)
    # table_ref: (V, 1, D_pad)    float32 VMEM (resident across the grid)
    # out_ref:   (TILE_N, D_pad)  float32 VMEM (lane-dense output tile)
    tile_n = out_ref.shape[0]
    base = pl.program_id(0) * tile_n
    # Static unroll: store offsets are compile-time constants; only the table
    # row index is dynamic, and it selects a whole (1, D_pad) leading-dim slab.
    for r in range(tile_n):
        row = idx_ref[base + r]                    # cheap scalar SMEM read
        out_ref[pl.ds(r, 1), :] = table_ref[row]   # (1, D_pad) row copy


def embedding_lookup(device_num_tensor, table, *, tile_n=128):
    """Equivalent of nn.Embedding(num_devices, emb_dim)(device_num_tensor)."""
    idx_shape = device_num_tensor.shape
    v, d = table.shape

    idx_flat = device_num_tensor.reshape(-1).astype(jnp.int32)
    # Clamp like jnp gather; also guards the in-kernel VMEM read.
    idx_flat = jnp.clip(idx_flat, 0, v - 1)
    n = idx_flat.shape[0]

    # Lane-dense embedding dim and sublane-friendly tile of the lookup axis.
    d_pad = _round_up(max(d, 1), 128)
    tile = _round_up(min(tile_n, _round_up(n, 8)), 8)
    n_pad = _round_up(n, tile)

    # Pad table to (V, 1, D_pad) row-slabs and indices to N_pad.
    table_p = jnp.zeros((v, 1, d_pad), dtype=table.dtype).at[:, 0, :d].set(table)
    idx_p = jnp.zeros((n_pad,), dtype=jnp.int32).at[:n].set(idx_flat)

    grid = (n_pad // tile,)
    out = pl.pallas_call(
        _gather_kernel,
        out_shape=jax.ShapeDtypeStruct((n_pad, d_pad), table.dtype),
        grid_spec=pltpu.PrefetchScalarGridSpec(
            num_scalar_prefetch=1,
            grid=grid,
            in_specs=[
                # Full table stays resident in VMEM across all grid steps.
                pl.BlockSpec((v, 1, d_pad), lambda i, idx: (0, 0, 0)),
            ],
            out_specs=pl.BlockSpec((tile, d_pad), lambda i, idx: (i, 0)),
        ),
        compiler_params=pltpu.CompilerParams(
            dimension_semantics=("parallel",),
            vmem_limit_bytes=32 * 1024 * 1024,
        ),
    )(idx_p, table_p)

    return out[:n, :d].reshape(idx_shape + (d,))


if __name__ == "__main__":
    num_devices = 16
    emb_dim = 11
    batch, seq = 2, 8

    key = jax.random.PRNGKey(0)
    k_table, k_idx = jax.random.split(key)

    # Deterministic "weights" (nn.Embedding default init ~ N(0, 1)).
    table = jax.random.normal(k_table, (num_devices, emb_dim), dtype=jnp.float32)
    # Integer indices (the device_num_tensor input).
    device_num_tensor = jax.random.randint(
        k_idx, (batch, seq), minval=0, maxval=num_devices, dtype=jnp.int32)

    out = embedding_lookup(device_num_tensor, table)
    out = jax.block_until_ready(out)

    # Reference check against plain JAX gather.
    ref = table[device_num_tensor]
    assert out.shape == (batch, seq, emb_dim), out.shape
    assert jnp.allclose(out, ref, atol=1e-6), "mismatch vs reference gather"
    print("KERNEL_OK")
</pallas_src>

<mosaic_0001>
module attributes {stable_mosaic.version = 11 : i64} {
  func.func @_gather_kernel(%arg0: i32, %arg1: memref<16xi32, #tpu.memory_space<smem>>, %arg2: memref<16x1x128xf32, #tpu.memory_space<vmem>>, %arg3: memref<16x128xf32, #tpu.memory_space<vmem>>) attributes {dimension_semantics = [#tpu.dimension_semantics<parallel>], iteration_bounds = array<i64: 1>, scalar_prefetch = 1 : i64, scratch_operands = 0 : i64, tpu.core_type = #tpu.core_type<tc>, window_params = [{pipeline_mode = #tpu.pipeline_mode<synchronous>, transform_indices = @transform_0, window_bounds = array<i64: 16, 1, 128>}, {transform_indices = @transform_1, window_bounds = array<i64: 16, 128>}]} {
    %c16_i32 = arith.constant 16 : i32
    %0 = arith.muli %arg0, %c16_i32 : i32
    %c0_i32 = arith.constant 0 : i32
    %1 = arith.addi %0, %c0_i32 : i32
    %2 = arith.index_cast %1 : i32 to index
    %3 = memref.load %arg1[%2] : memref<16xi32, #tpu.memory_space<smem>>
    %4 = arith.index_cast %3 : i32 to index
    %c0 = arith.constant 0 : index
    %c0_0 = arith.constant 0 : index
    %5 = vector.load %arg2[%4, %c0, %c0_0] : memref<16x1x128xf32, #tpu.memory_space<vmem>>, vector<1x1x128xf32>
    %6 = vector.shape_cast %5 : vector<1x1x128xf32> to vector<1x128xf32>
    %c0_1 = arith.constant 0 : index
    %c0_2 = arith.constant 0 : index
    %7 = vector.load %arg3[%c0_1, %c0_2] : memref<16x128xf32, #tpu.memory_space<vmem>>, vector<1x128xf32>
    tpu.vector_store %arg3[%c0_1, %c0_2], %6 {strides = array<i32>} : memref<16x128xf32, #tpu.memory_space<vmem>>, vector<1x128xf32>,
    %c1_i32 = arith.constant 1 : i32
    %8 = arith.addi %0, %c1_i32 : i32
    %9 = arith.index_cast %8 : i32 to index
    %10 = memref.load %arg1[%9] : memref<16xi32, #tpu.memory_space<smem>>
    %11 = arith.index_cast %10 : i32 to index
    %c0_3 = arith.constant 0 : index
    %c0_4 = arith.constant 0 : index
    %12 = vector.load %arg2[%11, %c0_3, %c0_4] : memref<16x1x128xf32, #tpu.memory_space<vmem>>, vector<1x1x128xf32>
    %13 = vector.shape_cast %12 : vector<1x1x128xf32> to vector<1x128xf32>
    %c1 = arith.constant 1 : index
    %c0_5 = arith.constant 0 : index
    %14 = vector.load %arg3[%c1, %c0_5] : memref<16x128xf32, #tpu.memory_space<vmem>>, vector<1x128xf32>
    tpu.vector_store %arg3[%c1, %c0_5], %13 {strides = array<i32>} : memref<16x128xf32, #tpu.memory_space<vmem>>, vector<1x128xf32>,
    %c2_i32 = arith.constant 2 : i32
    %15 = arith.addi %0, %c2_i32 : i32
    %16 = arith.index_cast %15 : i32 to index
    %17 = memref.load %arg1[%16] : memref<16xi32, #tpu.memory_space<smem>>
    %18 = arith.index_cast %17 : i32 to index
    %c0_6 = arith.constant 0 : index
    %c0_7 = arith.constant 0 : index
    %19 = vector.load %arg2[%18, %c0_6, %c0_7] : memref<16x1x128xf32, #tpu.memory_space<vmem>>, vector<1x1x128xf32>
    %20 = vector.shape_cast %19 : vector<1x1x128xf32> to vector<1x128xf32>
    %c2 = arith.constant 2 : index
    %c0_8 = arith.constant 0 : index
    %21 = vector.load %arg3[%c2, %c0_8] : memref<16x128xf32, #tpu.memory_space<vmem>>, vector<1x128xf32>
    tpu.vector_store %arg3[%c2, %c0_8], %20 {strides = array<i32>} : memref<16x128xf32, #tpu.memory_space<vmem>>, vector<1x128xf32>,
    %c3_i32 = arith.constant 3 : i32
    %22 = arith.addi %0, %c3_i32 : i32
    %23 = arith.index_cast %22 : i32 to index
    %24 = memref.load %arg1[%23] : memref<16xi32, #tpu.memory_space<smem>>
    %25 = arith.index_cast %24 : i32 to index
    %c0_9 = arith.constant 0 : index
    %c0_10 = arith.constant 0 : index
    %26 = vector.load %arg2[%25, %c0_9, %c0_10] : memref<16x1x128xf32, #tpu.memory_space<vmem>>, vector<1x1x128xf32>
    %27 = vector.shape_cast %26 : vector<1x1x128xf32> to vector<1x128xf32>
    %c3 = arith.constant 3 : index
    %c0_11 = arith.constant 0 : index
    %28 = vector.load %arg3[%c3, %c0_11] : memref<16x128xf32, #tpu.memory_space<vmem>>, vector<1x128xf32>
    tpu.vector_store %arg3[%c3, %c0_11], %27 {strides = array<i32>} : memref<16x128xf32, #tpu.memory_space<vmem>>, vector<1x128xf32>,
    %c4_i32 = arith.constant 4 : i32
    %29 = arith.addi %0, %c4_i32 : i32
    %30 = arith.index_cast %29 : i32 to index
    %31 = memref.load %arg1[%30] : memref<16xi32, #tpu.memory_space<smem>>
    %32 = arith.index_cast %31 : i32 to index
    %c0_12 = arith.constant 0 : index
    %c0_13 = arith.constant 0 : index
    %33 = vector.load %arg2[%32, %c0_12, %c0_13] : memref<16x1x128xf32, #tpu.memory_space<vmem>>, vector<1x1x128xf32>
    %34 = vector.shape_cast %33 : vector<1x1x128xf32> to vector<1x128xf32>
    %c4 = arith.constant 4 : index
    %c0_14 = arith.constant 0 : index
    %35 = vector.load %arg3[%c4, %c0_14] : memref<16x128xf32, #tpu.memory_space<vmem>>, vector<1x128xf32>
    tpu.vector_store %arg3[%c4, %c0_14], %34 {strides = array<i32>} : memref<16x128xf32, #tpu.memory_space<vmem>>, vector<1x128xf32>,
    %c5_i32 = arith.constant 5 : i32
    %36 = arith.addi %0, %c5_i32 : i32
    %37 = arith.index_cast %36 : i32 to index
    %38 = memref.load %arg1[%37] : memref<16xi32, #tpu.memory_space<smem>>
    %39 = arith.index_cast %38 : i32 to index
    %c0_15 = arith.constant 0 : index
    %c0_16 = arith.constant 0 : index
    %40 = vector.load %arg2[%39, %c0_15, %c0_16] : memref<16x1x128xf32, #tpu.memory_space<vmem>>, vector<1x1x128xf32>
    %41 = vector.shape_cast %40 : vector<1x1x128xf32> to vector<1x128xf32>
    %c5 = arith.constant 5 : index
    %c0_17 = arith.constant 0 : index
    %42 = vector.load %arg3[%c5, %c0_17] : memref<16x128xf32, #tpu.memory_space<vmem>>, vector<1x128xf32>
    tpu.vector_store %arg3[%c5, %c0_17], %41 {strides = array<i32>} : memref<16x128xf32, #tpu.memory_space<vmem>>, vector<1x128xf32>,
    %c6_i32 = arith.constant 6 : i32
    %43 = arith.addi %0, %c6_i32 : i32
    %44 = arith.index_cast %43 : i32 to index
    %45 = memref.load %arg1[%44] : memref<16xi32, #tpu.memory_space<smem>>
    %46 = arith.index_cast %45 : i32 to index
    %c0_18 = arith.constant 0 : index
    %c0_19 = arith.constant 0 : index
    %47 = vector.load %arg2[%46, %c0_18, %c0_19] : memref<16x1x128xf32, #tpu.memory_space<vmem>>, vector<1x1x128xf32>
    %48 = vector.shape_cast %47 : vector<1x1x128xf32> to vector<1x128xf32>
    %c6 = arith.constant 6 : index
    %c0_20 = arith.constant 0 : index
    %49 = vector.load %arg3[%c6, %c0_20] : memref<16x128xf32, #tpu.memory_space<vmem>>, vector<1x128xf32>
    tpu.vector_store %arg3[%c6, %c0_20], %48 {strides = array<i32>} : memref<16x128xf32, #tpu.memory_space<vmem>>, vector<1x128xf32>,
    %c7_i32 = arith.constant 7 : i32
    %50 = arith.addi %0, %c7_i32 : i32
    %51 = arith.index_cast %50 : i32 to index
    %52 = memref.load %arg1[%51] : memref<16xi32, #tpu.memory_space<smem>>
    %53 = arith.index_cast %52 : i32 to index
    %c0_21 = arith.constant 0 : index
    %c0_22 = arith.constant 0 : index
    %54 = vector.load %arg2[%53, %c0_21, %c0_22] : memref<16x1x128xf32, #tpu.memory_space<vmem>>, vector<1x1x128xf32>
    %55 = vector.shape_cast %54 : vector<1x1x128xf32> to vector<1x128xf32>
    %c7 = arith.constant 7 : index
    %c0_23 = arith.constant 0 : index
    %56 = vector.load %arg3[%c7, %c0_23] : memref<16x128xf32, #tpu.memory_space<vmem>>, vector<1x128xf32>
    tpu.vector_store %arg3[%c7, %c0_23], %55 {strides = array<i32>} : memref<16x128xf32, #tpu.memory_space<vmem>>, vector<1x128xf32>,
    %c8_i32 = arith.constant 8 : i32
    %57 = arith.addi %0, %c8_i32 : i32
    %58 = arith.index_cast %57 : i32 to index
    %59 = memref.load %arg1[%58] : memref<16xi32, #tpu.memory_space<smem>>
    %60 = arith.index_cast %59 : i32 to index
    %c0_24 = arith.constant 0 : index
    %c0_25 = arith.constant 0 : index
    %61 = vector.load %arg2[%60, %c0_24, %c0_25] : memref<16x1x128xf32, #tpu.memory_space<vmem>>, vector<1x1x128xf32>
    %62 = vector.shape_cast %61 : vector<1x1x128xf32> to vector<1x128xf32>
    %c8 = arith.constant 8 : index
    %c0_26 = arith.constant 0 : index
    %63 = vector.load %arg3[%c8, %c0_26] : memref<16x128xf32, #tpu.memory_space<vmem>>, vector<1x128xf32>
    tpu.vector_store %arg3[%c8, %c0_26], %62 {strides = array<i32>} : memref<16x128xf32, #tpu.memory_space<vmem>>, vector<1x128xf32>,
    %c9_i32 = arith.constant 9 : i32
    %64 = arith.addi %0, %c9_i32 : i32
    %65 = arith.index_cast %64 : i32 to index
    %66 = memref.load %arg1[%65] : memref<16xi32, #tpu.memory_space<smem>>
    %67 = arith.index_cast %66 : i32 to index
    %c0_27 = arith.constant 0 : index
    %c0_28 = arith.constant 0 : index
    %68 = vector.load %arg2[%67, %c0_27, %c0_28] : memref<16x1x128xf32, #tpu.memory_space<vmem>>, vector<1x1x128xf32>
    %69 = vector.shape_cast %68 : vector<1x1x128xf32> to vector<1x128xf32>
    %c9 = arith.constant 9 : index
    %c0_29 = arith.constant 0 : index
    %70 = vector.load %arg3[%c9, %c0_29] : memref<16x128xf32, #tpu.memory_space<vmem>>, vector<1x128xf32>
    tpu.vector_store %arg3[%c9, %c0_29], %69 {strides = array<i32>} : memref<16x128xf32, #tpu.memory_space<vmem>>, vector<1x128xf32>,
    %c10_i32 = arith.constant 10 : i32
    %71 = arith.addi %0, %c10_i32 : i32
    %72 = arith.index_cast %71 : i32 to index
    %73 = memref.load %arg1[%72] : memref<16xi32, #tpu.memory_space<smem>>
    %74 = arith.index_cast %73 : i32 to index
    %c0_30 = arith.constant 0 : index
    %c0_31 = arith.constant 0 : index
    %75 = vector.load %arg2[%74, %c0_30, %c0_31] : memref<16x1x128xf32, #tpu.memory_space<vmem>>, vector<1x1x128xf32>
    %76 = vector.shape_cast %75 : vector<1x1x128xf32> to vector<1x128xf32>
    %c10 = arith.constant 10 : index
    %c0_32 = arith.constant 0 : index
    %77 = vector.load %arg3[%c10, %c0_32] : memref<16x128xf32, #tpu.memory_space<vmem>>, vector<1x128xf32>
    tpu.vector_store %arg3[%c10, %c0_32], %76 {strides = array<i32>} : memref<16x128xf32, #tpu.memory_space<vmem>>, vector<1x128xf32>,
    %c11_i32 = arith.constant 11 : i32
    %78 = arith.addi %0, %c11_i32 : i32
    %79 = arith.index_cast %78 : i32 to index
    %80 = memref.load %arg1[%79] : memref<16xi32, #tpu.memory_space<smem>>
    %81 = arith.index_cast %80 : i32 to index
    %c0_33 = arith.constant 0 : index
    %c0_34 = arith.constant 0 : index
    %82 = vector.load %arg2[%81, %c0_33, %c0_34] : memref<16x1x128xf32, #tpu.memory_space<vmem>>, vector<1x1x128xf32>
    %83 = vector.shape_cast %82 : vector<1x1x128xf32> to vector<1x128xf32>
    %c11 = arith.constant 11 : index
    %c0_35 = arith.constant 0 : index
    %84 = vector.load %arg3[%c11, %c0_35] : memref<16x128xf32, #tpu.memory_space<vmem>>, vector<1x128xf32>
    tpu.vector_store %arg3[%c11, %c0_35], %83 {strides = array<i32>} : memref<16x128xf32, #tpu.memory_space<vmem>>, vector<1x128xf32>,
    %c12_i32 = arith.constant 12 : i32
    %85 = arith.addi %0, %c12_i32 : i32
    %86 = arith.index_cast %85 : i32 to index
    %87 = memref.load %arg1[%86] : memref<16xi32, #tpu.memory_space<smem>>
    %88 = arith.index_cast %87 : i32 to index
    %c0_36 = arith.constant 0 : index
    %c0_37 = arith.constant 0 : index
    %89 = vector.load %arg2[%88, %c0_36, %c0_37] : memref<16x1x128xf32, #tpu.memory_space<vmem>>, vector<1x1x128xf32>
    %90 = vector.shape_cast %89 : vector<1x1x128xf32> to vector<1x128xf32>
    %c12 = arith.constant 12 : index
    %c0_38 = arith.constant 0 : index
    %91 = vector.load %arg3[%c12, %c0_38] : memref<16x128xf32, #tpu.memory_space<vmem>>, vector<1x128xf32>
    tpu.vector_store %arg3[%c12, %c0_38], %90 {strides = array<i32>} : memref<16x128xf32, #tpu.memory_space<vmem>>, vector<1x128xf32>,
    %c13_i32 = arith.constant 13 : i32
    %92 = arith.addi %0, %c13_i32 : i32
    %93 = arith.index_cast %92 : i32 to index
    %94 = memref.load %arg1[%93] : memref<16xi32, #tpu.memory_space<smem>>
    %95 = arith.index_cast %94 : i32 to index
    %c0_39 = arith.constant 0 : index
    %c0_40 = arith.constant 0 : index
    %96 = vector.load %arg2[%95, %c0_39, %c0_40] : memref<16x1x128xf32, #tpu.memory_space<vmem>>, vector<1x1x128xf32>
    %97 = vector.shape_cast %96 : vector<1x1x128xf32> to vector<1x128xf32>
    %c13 = arith.constant 13 : index
    %c0_41 = arith.constant 0 : index
    %98 = vector.load %arg3[%c13, %c0_41] : memref<16x128xf32, #tpu.memory_space<vmem>>, vector<1x128xf32>
    tpu.vector_store %arg3[%c13, %c0_41], %97 {strides = array<i32>} : memref<16x128xf32, #tpu.memory_space<vmem>>, vector<1x128xf32>,
    %c14_i32 = arith.constant 14 : i32
    %99 = arith.addi %0, %c14_i32 : i32
    %100 = arith.index_cast %99 : i32 to index
    %101 = memref.load %arg1[%100] : memref<16xi32, #tpu.memory_space<smem>>
    %102 = arith.index_cast %101 : i32 to index
    %c0_42 = arith.constant 0 : index
    %c0_43 = arith.constant 0 : index
    %103 = vector.load %arg2[%102, %c0_42, %c0_43] : memref<16x1x128xf32, #tpu.memory_space<vmem>>, vector<1x1x128xf32>
    %104 = vector.shape_cast %103 : vector<1x1x128xf32> to vector<1x128xf32>
    %c14 = arith.constant 14 : index
    %c0_44 = arith.constant 0 : index
    %105 = vector.load %arg3[%c14, %c0_44] : memref<16x128xf32, #tpu.memory_space<vmem>>, vector<1x128xf32>
    tpu.vector_store %arg3[%c14, %c0_44], %104 {strides = array<i32>} : memref<16x128xf32, #tpu.memory_space<vmem>>, vector<1x128xf32>,
    %c15_i32 = arith.constant 15 : i32
    %106 = arith.addi %0, %c15_i32 : i32
    %107 = arith.index_cast %106 : i32 to index
    %108 = memref.load %arg1[%107] : memref<16xi32, #tpu.memory_space<smem>>
    %109 = arith.index_cast %108 : i32 to index
    %c0_45 = arith.constant 0 : index
    %c0_46 = arith.constant 0 : index
    %110 = vector.load %arg2[%109, %c0_45, %c0_46] : memref<16x1x128xf32, #tpu.memory_space<vmem>>, vector<1x1x128xf32>
    %111 = vector.shape_cast %110 : vector<1x1x128xf32> to vector<1x128xf32>
    %c15 = arith.constant 15 : index
    %c0_47 = arith.constant 0 : index
    %112 = vector.load %arg3[%c15, %c0_47] : memref<16x128xf32, #tpu.memory_space<vmem>>, vector<1x128xf32>
    tpu.vector_store %arg3[%c15, %c0_47], %111 {strides = array<i32>} : memref<16x128xf32, #tpu.memory_space<vmem>>, vector<1x128xf32>,
    return
  }
  func.func @transform_0(%arg0: i32, %arg1: memref<16xi32, #tpu.memory_space<smem>>) -> (i32, i32, i32) {
    %c0_i32 = arith.constant 0 : i32
    %c0_i32_0 = arith.constant 0 : i32
    %c0_i32_1 = arith.constant 0 : i32
    %c0_i32_2 = arith.constant 0 : i32
    return %c0_i32, %c0_i32_0, %c0_i32_1 : i32, i32, i32
  }
  func.func @transform_1(%arg0: i32, %arg1: memref<16xi32, #tpu.memory_space<smem>>) -> (i32, i32) {
    %c0_i32 = arith.constant 0 : i32
    %c0_i32_0 = arith.constant 0 : i32
    return %arg0, %c0_i32 : i32, i32
  }
}

</mosaic_0001>

<bundles_post_ra>
// kernel: tpu_custom_call.1
= control target key start
LH: loop header
LB: loop body
LE: loop exit
PB: predicated region body
PF: predicated region fallthrough
CT: control target
= control target key end

     0   :  { %s300_s0 = inlined_call_operand.hbm [shape: s32[16], index: 0, kind: input, shape index: {}]   ;;  %s301_s1 = inlined_call_operand.hbm [shape: f32[16,1,128], index: 1, kind: input, shape index: {}]   ;;  %s302_s2 = inlined_call_operand.hbm [shape: f32[16,128], index: 2, kind: output, shape index: {}]  }
   0x1   :  { %s163_s11 = scalar_lea.hbm %s300_s0, 16 }
   0x2   :  { %p164_p0 = scmp.ne.s32.totalorder %s300_s0, %s163_s11  ;;  %p167_p1 = scmp.lt.u32.totalorder %s163_s11, %s300_s0 }
   0x4   :  { %p169_p2 = pnand %p167_p1, %p164_p0 }
   0x6   :  { %172 = shalt.err (!%p169_p2)  }
   0x7   :  { %s223_s16 = smov [#allocation3]  }
   0x8   :  { %8 = dma.hbm_to_smem %s300_s0, 16, %s223_s16, [#allocation2] }
   0x9   :  { %217 = dma.done.wait [#allocation2], 16 }
   0xa   :  { %218 = vsyncadd [#allocation2], 4294967280 }
   0xb   :  { %10 = sfence }
   0xc   :  { %11 = vsyncpa [#allocation5], 0 }
   0xd   :  { %12 = vsyncpa [#allocation6], 0  ;;  %s224_s19 = smov [#allocation4]   ;;  %s173_s23 = scalar_lea.hbm %s301_s1, 256 }
   0xe   :  { %s18_s20 = sshll.u32 %s224_s19, 4  ;;  %p174_p3 = scmp.ne.s32.totalorder %s301_s1, %s173_s23  ;;  %s19_s20 = int_to_ptr.vmem [resolvable:$true] %s18_s20 }
   0xf   :  { %p177_p4 = scmp.lt.u32.totalorder %s173_s23, %s301_s1 }
  0x11   :  { %p179_p5 = pnand %p177_p4, %p174_p3 }
  0x13   :  { %182 = shalt.err (!%p179_p5)
}
  0x14   :  { %s183_s0 = scalar_lea.vmem %s19_s20, 256  ;;  %p188_p7 = scmp.lt.s32.totalorder %s19_s20, %s19_s20 }
  0x15   :  { %p184_p6 = scmp.ne.s32.totalorder %s19_s20, %s183_s0  ;;  %p189_p8 = scmp.lt.s32.totalorder %s183_s0, %s183_s0 }
  0x17   :  { %p190_p9 = por %p189_p8, %p188_p7 }
  0x19   :  { %p191_p10 = pnand %p190_p9, %p184_p6 }
  0x1b   :  { %194 = shalt.err (!%p191_p10)
}
  0x1c   :  { %s225_s28 = smov 16   ;;  %s226_s29 = smov 1  }
  0x1d   :  { %24 = dma.hbm_to_vmem [thread:$0]  %s301_s1, 256, %s19_s20, [#allocation5], %s225_s28, %s225_s28, %s226_s29  }
  0x1e   :  { %219 = dma.done.wait [#allocation5], 256  }
  0x1f   :  { %220 = vsyncadd [#allocation5], 4294967040  ;;  %s29_s4 = sld [smem:[#allocation3]]  ;;  %s141_s5 = sld [smem:[#allocation3 + $0x1]] }
  0x20   :  { %s142_s6 = sld [smem:[#allocation3 + $0x2]]  ;;  %s143_s7 = sld [smem:[#allocation3 + $0x3]] }
  0x21   :  { %s144_s8 = sld [smem:[#allocation3 + $0x4]]  ;;  %s145_s9 = sld [smem:[#allocation3 + $0x5]] }
  0x22   :  { %s146_s10 = sld [smem:[#allocation3 + $0x6]]  ;;  %s147_s11 = sld [smem:[#allocation3 + $0x7]] }
  0x23   :  { %s269_s12 = sld [smem:[#allocation3 + $0x8]]  ;;  %s271_s13 = sld [smem:[#allocation3 + $0x9]] }
  0x24   :  { %s273_s14 = sld [smem:[#allocation3 + $0xa]]  ;;  %s275_s15 = sld [smem:[#allocation3 + $0xb]] }
  0x25   :  { %s30_s16 = scalar_lea.vmem [#allocation4], %s29_s4  ;;  %s35_s1 = scalar_lea.vmem [#allocation4], %s141_s5 }
  0x26   :  { %v31_v0 = vld [vmem:[%s30_s16] sm:$0x1]  ;;  %s40_s17 = scalar_lea.vmem [#allocation4], %s142_s6  ;;  %s45_s18 = scalar_lea.vmem [#allocation4], %s143_s7 }
  0x27   :  { %v36_v1 = vld [vmem:[%s35_s1] sm:$0x1]  ;;  %32 = vst [vmem:[#allocation7] sm:$0x1] %v31_v0  ;;  %s50_s19 = scalar_lea.vmem [#allocation4], %s144_s8  ;;  %s55_s20 = scalar_lea.vmem [#allocation4], %s145_s9 }
  0x28   :  { %37 = vst [vmem:[#allocation7 + $0x1] sm:$0x1] %v36_v1  ;;  %v41_v2 = vld [vmem:[%s40_s17] sm:$0x1]  ;;  %s60_s21 = scalar_lea.vmem [#allocation4], %s146_s10  ;;  %s65_s22 = scalar_lea.vmem [#allocation4], %s147_s11 }
  0x29   :  { %v46_v3 = vld [vmem:[%s45_s18] sm:$0x1]  ;;  %42 = vst [vmem:[#allocation7 + $0x2] sm:$0x1] %v41_v2  ;;  %s70_s23 = scalar_lea.vmem [#allocation4], %s269_s12  ;;  %s75_s24 = scalar_lea.vmem [#allocation4], %s271_s13 }
  0x2a   :  { %47 = vst [vmem:[#allocation7 + $0x3] sm:$0x1] %v46_v3  ;;  %v51_v4 = vld [vmem:[%s50_s19] sm:$0x1]  ;;  %s80_s25 = scalar_lea.vmem [#allocation4], %s273_s14  ;;  %s85_s26 = scalar_lea.vmem [#allocation4], %s275_s15 }
  0x2b   :  { %v56_v5 = vld [vmem:[%s55_s20] sm:$0x1]  ;;  %52 = vst [vmem:[#allocation7 + $0x4] sm:$0x1] %v51_v4  ;;  %s152_s27 = sld [smem:[#allocation3 + $0xc]]  ;;  %s153_s0 = sld [smem:[#allocation3 + $0xd]] }
  0x2c   :  { %57 = vst [vmem:[#allocation7 + $0x5] sm:$0x1] %v56_v5  ;;  %v61_v6 = vld [vmem:[%s60_s21] sm:$0x1]  ;;  %s154_s28 = sld [smem:[#allocation3 + $0xe]]  ;;  %s155_s29 = sld [smem:[#allocation3 + $0xf]] }
  0x2d   :  { %v66_v7 = vld [vmem:[%s65_s22] sm:$0x1]  ;;  %62 = vst [vmem:[#allocation7 + $0x6] sm:$0x1] %v61_v6  ;;  %s227_s30 = smov [#allocation7]  }
  0x2e   :  { %67 = vst [vmem:[#allocation7 + $0x7] sm:$0x1] %v66_v7  ;;  %v71_v8 = vld [vmem:[%s70_s23] sm:$0x1]  ;;  %s113_s3 = sshll.u32 %s227_s30, 4  ;;  %s281_s3 = int_to_ptr.vmem [resolvable:$true] %s113_s3 }
  0x2f   :  { %v76_v9 = vld [vmem:[%s75_s24] sm:$0x1]  ;;  %72 = vst [vmem:[#allocation7 + $0x8] sm:$0x1] %v71_v8  ;;  %s195_s8 = scalar_lea.vmem %s281_s3, 256  ;;  %p200_p12 = scmp.lt.s32.totalorder %s281_s3, %s281_s3 }
  0x30   :  { %77 = vst [vmem:[#allocation7 + $0x9] sm:$0x1] %v76_v9  ;;  %v81_v10 = vld [vmem:[%s80_s25] sm:$0x1]  ;;  %p196_p11 = scmp.ne.s32.totalorder %s281_s3, %s195_s8  ;;  %p201_p13 = scmp.lt.s32.totalorder %s195_s8, %s195_s8 }
  0x31   :  { %v86_v11 = vld [vmem:[%s85_s26] sm:$0x1]  ;;  %82 = vst [vmem:[#allocation7 + $0xa] sm:$0x1] %v81_v10  ;;  %s90_s4 = scalar_lea.vmem [#allocation4], %s152_s27  ;;  %s95_s5 = scalar_lea.vmem [#allocation4], %s153_s0 }
  0x32   :  { %87 = vst [vmem:[#allocation7 + $0xb] sm:$0x1] %v86_v11  ;;  %v91_v12 = vld [vmem:[%s90_s4] sm:$0x1]  ;;  %s100_s6 = scalar_lea.vmem [#allocation4], %s154_s28  ;;  %s105_s7 = scalar_lea.vmem [#allocation4], %s155_s29 }
  0x33   :  { %92 = vst [vmem:[#allocation7 + $0xc] sm:$0x1] %v91_v12  ;;  %v96_v13 = vld [vmem:[%s95_s5] sm:$0x1]  ;;  %p202_p0 = por %p201_p13, %p200_p12 }
  0x34   :  { %v101_v14 = vld [vmem:[%s100_s6] sm:$0x1]  ;;  %97 = vst [vmem:[#allocation7 + $0xd] sm:$0x1] %v96_v13 }
  0x35   :  { %102 = vst [vmem:[#allocation7 + $0xe] sm:$0x1] %v101_v14  ;;  %v106_v15 = vld [vmem:[%s105_s7] sm:$0x1]  ;;  %p203_p1 = pnand %p202_p0, %p196_p11 }
  0x36   :  { %107 = vst [vmem:[#allocation7 + $0xf] sm:$0x1] %v106_v15 }
  0x37   :  { %206 = shalt.err (!%p203_p1)
}
  0x38   :  { %s207_s11 = scalar_lea.hbm %s302_s2, 256 }
  0x39   :  { %p208_p2 = scmp.ne.s32.totalorder %s302_s2, %s207_s11  ;;  %p211_p3 = scmp.lt.u32.totalorder %s207_s11, %s302_s2 }
  0x3b   :  { %p213_p4 = pnand %p211_p3, %p208_p2 }
  0x3d   :  { %216 = shalt.err (!%p213_p4)
}
  0x3e   :  { %s228_s16 = smov 128   ;;  %s229_s1 = smov 8  }
  0x3f   :  { %119 = dma.vmem_to_hbm [thread:$0]  %s281_s3, 256, %s302_s2, [#allocation6], %s228_s16, %s228_s16, %s229_s1  }
  0x40   :  { %221 = dma.done.wait [#allocation6], 256  }
  0x41   :  { %222 = vsyncadd [#allocation6], 4294967040 }
  0x42   :  { %123 = vsyncpa [#allocation5], 1 }
  0x43   :  { %124 = vsyncpa [#allocation6], 1 }

</bundles_post_ra>
